<compile_context>
chip_gen: v6e
topology: v6e:2x2x1
jax: 0.10.0
libtpu: 0.0.40
codegen_flags: <defaults>
</compile_context>

<pallas_src>
import numpy as np

import jax
import jax.numpy as jnp
from jax import lax
from jax.experimental import pallas as pl
from jax.experimental.pallas import tpu as pltpu

LN_EPS = 1e-5


def _round_up(a, b):
    return (a + b - 1) // b * b


def _vmem_budget_bytes():
    """Physical VMEM of the current TPU generation minus headroom."""
    try:
        cap = int(pltpu.get_tpu_info().vmem_capacity_bytes)
    except Exception:  # query unavailable -> assume the smallest (v7x, 64 MiB)
        cap = 64 * 1024 * 1024
    return cap - 8 * 1024 * 1024


def upsample_kernel(x_ref, w_ref, p_ref, o_ref):
    # x_ref: [dim, TM]  column block of the channels-first input
    # w_ref: [dim, C]   pointwise-conv weight (transposed), C = 4*dim
    # p_ref: [3, C]     packed f32 rows: 0 = conv bias, 1 = LN gamma, 2 = LN beta
    # o_ref: [TM, C]
    #
    # Pointwise Conv3d == matmul contracting the channel axis (leading axis of
    # both operands).  MXU with f32 accumulation; no input up-cast.
    # TODO(synk): check the Mosaic dump for a vxpose of the x tile; if present
    # and the MXU-bound (large-dim) regime matters, pay a one-time channels-last
    # relayout and feed [tm, dim] blocks instead.
    y = lax.dot_general(
        x_ref[...], w_ref[...],
        dimension_numbers=(((0,), (0,)), ((), ())),
        preferred_element_type=jnp.float32,
    ) + p_ref[0:1, :]                                     # + conv bias

    # One-pass LayerNorm statistics: both lane reductions depend only on y, so
    # they overlap (no serial reduce->broadcast->subtract->square->reduce chain).
    inv_c = 1.0 / y.shape[-1]
    mean = jnp.sum(y, axis=-1, keepdims=True) * inv_c
    ex2 = jnp.sum(y * y, axis=-1, keepdims=True) * inv_c
    var = jnp.maximum(ex2 - mean * mean, 0.0)
    scale = lax.rsqrt(var + LN_EPS) * p_ref[1:2, :]       # gamma folded into scale
    o_ref[...] = ((y - mean) * scale + p_ref[2:3, :]).astype(o_ref.dtype)


def upsample_forward(x, T, H, W, conv_w, conv_b, ln_gamma, ln_beta, *,
                     tm=512, compute_dtype=None):
    """UpSample forward.

    x:      [B, T*(H//2)*(W//2), dim]  (any [B, L, d] with L*d == N*dim works,
                                        exactly like torch's flat reshape)
    conv_w: [4*dim, dim, 1, 1, 1];  conv_b / ln_gamma / ln_beta: [4*dim]
    returns [B, T*H*W, dim]
    """
    B = x.shape[0]
    dim = conv_w.shape[1]
    C = 4 * dim
    H2, W2 = H // 2, W // 2
    N = T * H2 * W2
    assert x.shape[1] * x.shape[2] == N * dim, (
        f"flat size mismatch: x={x.shape}, N={N}, dim={dim}")

    out_dtype = x.dtype

    # Optional bf16 compute path (recommended when the model runs this in f32):
    # halves HBM read traffic for x / w and hits the native bf16 MXU path.
    if compute_dtype is not None:
        x = x.astype(compute_dtype)
        conv_w = conv_w.astype(compute_dtype)

    # Torch's flat-buffer reinterpretation: [B, L, d] -> [B, dim, N] (columns in
    # (t, h, w) order).  Logically free; XLA may emit one relayout copy here
    # because the minor dim changes (see header TODO for the manual-DMA option).
    x3 = x.reshape(B, dim, N)

    w_mat = conv_w.reshape(C, dim).T                       # [dim, C]
    params = jnp.stack([jnp.reshape(conv_b, (C,)).astype(jnp.float32),
                        jnp.reshape(ln_gamma, (C,)).astype(jnp.float32),
                        jnp.reshape(ln_beta, (C,)).astype(jnp.float32)], axis=0)

    # ---- Row-tile selection --------------------------------------------------
    tm_rounded = max(128, _round_up(int(tm), 128))
    # Either one full-extent block (any N) or 128-multiple blocks with a ragged
    # final block handled by Pallas (no jnp.pad / output-slice HBM round trips).
    tm_eff = N if N <= tm_rounded else tm_rounded

    # Make sure both v7x TensorCores get work when B == 1 (no-op on v5e/v6e).
    if B * pl.cdiv(N, tm_eff) < 2 and N > 128:
        tm_eff = _round_up(pl.cdiv(N, 2), 128)

    # Generation-aware VMEM budget (v5e/v6e: 128 MiB physical, v7x: 64 MiB).
    budget = _vmem_budget_bytes()
    x_isz = x3.dtype.itemsize
    w_isz = w_mat.dtype.itemsize
    o_isz = np.dtype(out_dtype).itemsize

    def vmem_est(tm_):
        return (2 * dim * tm_ * x_isz        # x tile (double-buffered)
                + 2 * dim * C * w_isz        # weight (constant index -> 1 DMA, 2 bufs)
                + 2 * 8 * C * 4              # packed bias/gamma/beta (sublane-padded)
                + 2 * tm_ * C * o_isz        # output tile (double-buffered)
                + 3 * tm_ * C * 4)           # f32 conv result + LN temporaries

    while tm_eff > 128 and vmem_est(tm_eff) > budget:
        tm_eff = max(128, _round_up(tm_eff // 2, 128))
    # TODO(synk): if even tm_eff == 128 does not fit (dim ~> 2.5-3K on v7x),
    # split the contraction over a K grid axis with an f32 VMEM accumulator.

    grid_n = pl.cdiv(N, tm_eff)
    vmem_limit_bytes = int(min(max(2 * vmem_est(tm_eff), 32 * 1024 * 1024),
                               budget))

    out = pl.pallas_call(
        upsample_kernel,
        out_shape=jax.ShapeDtypeStruct((B, N, C), out_dtype),
        grid_spec=pltpu.PrefetchScalarGridSpec(
            num_scalar_prefetch=0,
            grid=(B, grid_n),
            in_specs=[
                pl.BlockSpec((None, dim, tm_eff), lambda b, j: (b, 0, j)),
                pl.BlockSpec((dim, C), lambda b, j: (0, 0)),
                pl.BlockSpec((3, C), lambda b, j: (0, 0)),
            ],
            out_specs=pl.BlockSpec((None, tm_eff, C), lambda b, j: (b, j, 0)),
        ),
        compiler_params=pltpu.CompilerParams(
            dimension_semantics=("parallel", "parallel"),
            vmem_limit_bytes=vmem_limit_bytes),
    )(x3, w_mat, params)

    # Rows of [B, N, 4*dim] are in (t, h, w) order == [B, T, H//2, W//2, 4*dim]
    # row-major, so the final torch reshape is again a pure reinterpretation.
    return out.reshape(B, T * H * W, dim)


def upsample_reference(x, T, H, W, conv_w, conv_b, ln_gamma, ln_beta):
    """Pure-JAX reference mirroring the PyTorch forward (f32, highest precision)."""
    B = x.shape[0]
    dim = conv_w.shape[1]
    C = 4 * dim
    H2, W2 = H // 2, W // 2
    x5 = x.reshape(B, dim, T, H2, W2).astype(jnp.float32)
    w_mat = conv_w.reshape(C, dim).astype(jnp.float32)
    y = jnp.einsum("bcthw,oc->bthwo", x5, w_mat,
                   precision=lax.Precision.HIGHEST) + conv_b.astype(jnp.float32)
    mean = jnp.mean(y, axis=-1, keepdims=True)
    var = jnp.mean((y - mean) ** 2, axis=-1, keepdims=True)
    y = ((y - mean) / jnp.sqrt(var + LN_EPS) * ln_gamma.astype(jnp.float32)
         + ln_beta.astype(jnp.float32))
    return y.reshape(B, T * H * W, dim)


def _run_and_check(key, B, dim, T, H, W, x_dtype, tol, **fwd_kwargs):
    H2, W2 = H // 2, W // 2
    N = T * H2 * W2
    C = 4 * dim
    ks = jax.random.split(key, 5)
    x = jax.random.normal(ks[0], (B, N, dim), jnp.float32).astype(x_dtype)
    conv_w = (jax.random.normal(ks[1], (C, dim, 1, 1, 1), jnp.float32)
              * (1.0 / np.sqrt(dim))).astype(x_dtype)
    conv_b = jax.random.normal(ks[2], (C,), jnp.float32) * 0.1
    ln_g = 1.0 + 0.1 * jax.random.normal(ks[3], (C,), jnp.float32)
    ln_b = 0.1 * jax.random.normal(ks[4], (C,), jnp.float32)

    out = jax.block_until_ready(
        upsample_forward(x, T, H, W, conv_w, conv_b, ln_g, ln_b, **fwd_kwargs))
    assert out.shape == (B, T * H * W, dim), out.shape

    cd = fwd_kwargs.get("compute_dtype")
    xr = x if cd is None else x.astype(cd)
    wr = conv_w if cd is None else conv_w.astype(cd)
    ref = upsample_reference(xr.astype(jnp.float32), T, H, W,
                             wr.astype(jnp.float32), conv_b, ln_g, ln_b)
    np.testing.assert_allclose(np.asarray(out, dtype=np.float32),
                               np.asarray(ref), rtol=tol, atol=tol)


if __name__ == "__main__":
    root = jax.random.PRNGKey(0)
    k1, k2 = jax.random.split(root)

    # Config 1: f32 activations routed through the recommended bf16 compute
    # path; N (=128) divides the tile exactly. B=2, dim=32, T=2, H=W=16.
    _run_and_check(k1, B=2, dim=32, T=2, H=16, W=16, x_dtype=jnp.float32,
                   tol=2e-3, compute_dtype=jnp.bfloat16)

    # Config 2: bf16 end-to-end, B=1 (megacore split kicks in) and a ragged
    # final row block (N = 168, tiles of 128) exercising the no-pad path.
    _run_and_check(k2, B=1, dim=32, T=3, H=16, W=14, x_dtype=jnp.bfloat16,
                   tol=3e-2)

    print("KERNEL_OK")
</pallas_src>

<mosaic_0001>
module attributes {stable_mosaic.version = 11 : i64} {
  func.func @upsample_kernel(%arg0: i32, %arg1: i32, %arg2: memref<1x32x128xbf16, #tpu.memory_space<vmem>>, %arg3: memref<32x128xbf16, #tpu.memory_space<vmem>>, %arg4: memref<3x128xf32, #tpu.memory_space<vmem>>, %arg5: memref<1x128x128xf32, #tpu.memory_space<vmem>>) attributes {dimension_semantics = [#tpu.dimension_semantics<parallel>, #tpu.dimension_semantics<parallel>], iteration_bounds = array<i64: 2, 1>, scalar_prefetch = 0 : i64, scratch_operands = 0 : i64, tpu.core_type = #tpu.core_type<tc>, window_params = [{transform_indices = @transform_0, window_bounds = array<i64: 1, 32, 128>}, {pipeline_mode = #tpu.pipeline_mode<synchronous>, transform_indices = @transform_1, window_bounds = array<i64: 32, 128>}, {pipeline_mode = #tpu.pipeline_mode<synchronous>, transform_indices = @transform_2, window_bounds = array<i64: 3, 128>}, {transform_indices = @transform_3, window_bounds = array<i64: 1, 128, 128>}]} {
    %c0 = arith.constant 0 : index
    %c0_0 = arith.constant 0 : index
    %c0_1 = arith.constant 0 : index
    %0 = vector.load %arg2[%c0, %c0_0, %c0_1] : memref<1x32x128xbf16, #tpu.memory_space<vmem>>, vector<1x32x128xbf16>
    %1 = vector.shape_cast %0 : vector<1x32x128xbf16> to vector<32x128xbf16>
    %c0_2 = arith.constant 0 : index
    %c0_3 = arith.constant 0 : index
    %2 = vector.load %arg3[%c0_2, %c0_3] : memref<32x128xbf16, #tpu.memory_space<vmem>>, vector<32x128xbf16>
    %cst = arith.constant dense<0.000000e+00> : vector<128x128xf32>
    %3 = tpu.matmul %1, %2, %cst {dimension_numbers = #tpu.dot_dimension_numbers<[0], [0], [1], [1], [0, 1, 1, 1], [], []>} : vector<32x128xbf16>, vector<32x128xbf16>, vector<128x128xf32> -> vector<128x128xf32>
    %c0_4 = arith.constant 0 : index
    %c0_5 = arith.constant 0 : index
    %4 = vector.load %arg4[%c0_4, %c0_5] : memref<3x128xf32, #tpu.memory_space<vmem>>, vector<1x128xf32>
    %5 = vector.broadcast %4 : vector<1x128xf32> to vector<128x128xf32>
    %6 = arith.addf %3, %5 : vector<128x128xf32>
    %cst_6 = arith.constant dense<0.000000e+00> : vector<128xf32>
    %7 = vector.multi_reduction <add>, %6, %cst_6 [1] : vector<128x128xf32> to vector<128xf32>
    %8 = vector.shape_cast %7 : vector<128xf32> to vector<128x1xf32>
    %cst_7 = arith.constant 7.812500e-03 : f32
    %9 = vector.broadcast %cst_7 : f32 to vector<128x1xf32>
    %10 = arith.mulf %8, %9 : vector<128x1xf32>
    %11 = arith.mulf %6, %6 : vector<128x128xf32>
    %cst_8 = arith.constant dense<0.000000e+00> : vector<128xf32>
    %12 = vector.multi_reduction <add>, %11, %cst_8 [1] : vector<128x128xf32> to vector<128xf32>
    %13 = vector.shape_cast %12 : vector<128xf32> to vector<128x1xf32>
    %cst_9 = arith.constant 7.812500e-03 : f32
    %14 = vector.broadcast %cst_9 : f32 to vector<128x1xf32>
    %15 = arith.mulf %13, %14 : vector<128x1xf32>
    %16 = arith.mulf %10, %10 : vector<128x1xf32>
    %17 = arith.subf %15, %16 : vector<128x1xf32>
    %cst_10 = arith.constant 0.000000e+00 : f32
    %18 = vector.broadcast %cst_10 : f32 to vector<128x1xf32>
    %19 = arith.maximumf %17, %18 : vector<128x1xf32>
    %cst_11 = arith.constant 9.99999974E-6 : f32
    %20 = vector.broadcast %cst_11 : f32 to vector<128x1xf32>
    %21 = arith.addf %19, %20 : vector<128x1xf32>
    %22 = math.rsqrt %21 : vector<128x1xf32>
    %c1 = arith.constant 1 : index
    %c0_12 = arith.constant 0 : index
    %23 = vector.load %arg4[%c1, %c0_12] : memref<3x128xf32, #tpu.memory_space<vmem>>, vector<1x128xf32>
    %24 = vector.broadcast %22 : vector<128x1xf32> to vector<128x128xf32>
    %25 = vector.broadcast %23 : vector<1x128xf32> to vector<128x128xf32>
    %26 = arith.mulf %24, %25 : vector<128x128xf32>
    %27 = vector.broadcast %10 : vector<128x1xf32> to vector<128x128xf32>
    %28 = arith.subf %6, %27 : vector<128x128xf32>
    %29 = arith.mulf %28, %26 : vector<128x128xf32>
    %c2 = arith.constant 2 : index
    %c0_13 = arith.constant 0 : index
    %30 = vector.load %arg4[%c2, %c0_13] : memref<3x128xf32, #tpu.memory_space<vmem>>, vector<1x128xf32>
    %31 = vector.broadcast %30 : vector<1x128xf32> to vector<128x128xf32>
    %32 = arith.addf %29, %31 : vector<128x128xf32>
    %c0_14 = arith.constant 0 : index
    %c0_15 = arith.constant 0 : index
    %c0_16 = arith.constant 0 : index
    %33 = vector.load %arg5[%c0_14, %c0_15, %c0_16] : memref<1x128x128xf32, #tpu.memory_space<vmem>>, vector<1x128x128xf32>
    %34 = vector.shape_cast %33 : vector<1x128x128xf32> to vector<128x128xf32>
    %35 = vector.shape_cast %32 : vector<128x128xf32> to vector<1x128x128xf32>
    tpu.vector_store %arg5[%c0_14, %c0_15, %c0_16], %35 {strides = array<i32>} : memref<1x128x128xf32, #tpu.memory_space<vmem>>, vector<1x128x128xf32>,
    return
  }
  func.func @transform_0(%arg0: i32, %arg1: i32) -> (i32, i32, i32) {
    %c0_i32 = arith.constant 0 : i32
    %c0_i32_0 = arith.constant 0 : i32
    return %arg0, %c0_i32, %arg1 : i32, i32, i32
  }
  func.func @transform_1(%arg0: i32, %arg1: i32) -> (i32, i32) {
    %c0_i32 = arith.constant 0 : i32
    %c0_i32_0 = arith.constant 0 : i32
    %c0_i32_1 = arith.constant 0 : i32
    return %c0_i32, %c0_i32_0 : i32, i32
  }
  func.func @transform_2(%arg0: i32, %arg1: i32) -> (i32, i32) {
    %c0_i32 = arith.constant 0 : i32
    %c0_i32_0 = arith.constant 0 : i32
    %c0_i32_1 = arith.constant 0 : i32
    return %c0_i32, %c0_i32_0 : i32, i32
  }
  func.func @transform_3(%arg0: i32, %arg1: i32) -> (i32, i32, i32) {
    %c0_i32 = arith.constant 0 : i32
    %c0_i32_0 = arith.constant 0 : i32
    return %arg0, %arg1, %c0_i32 : i32, i32, i32
  }
}

</mosaic_0001>

<bundles_post_ra>
// kernel: tpu_custom_call.1
= control target key start
LH: loop header
LB: loop body
LE: loop exit
PB: predicated region body
PF: predicated region fallthrough
CT: control target
= control target key end

     0   :  { %8 = vsyncpa [#allocation3], 0  ;;  %s1637_s0 = inlined_call_operand.hbm [shape: bf16[2,32,128], index: 0, kind: input, shape index: {}]   ;;  %s1638_s1 = inlined_call_operand.hbm [shape: bf16[32,128], index: 1, kind: input, shape index: {}]   ;;  %s1639_s2 = inlined_call_operand.hbm [shape: f32[3,128], index: 2, kind: input, shape index: {}]   ;;  %s1640_s3 = inlined_call_operand.hbm [shape: f32[2,128,128], index: 3, kind: output, shape index: {}]  }
   0x1   :  { %10 = vsyncpa [#allocation3 + $0x1], 0 }
   0x2   :  { %11 = vsyncpa [#allocation6], 0 }
   0x3   :  { %12 = vsyncpa [#allocation4], 0 }
   0x4   :  { %14 = vsyncpa [#allocation4 + $0x1], 0  ;;  %s1201_s12 = smov 0   ;;  %s1203_s13 = smov 0  }
   0x5   :  { %s1205_s14 = smov 0   ;;  %s1207_s15 = smov 0  }
   0x6   :  { %s1209_s16 = smov 0   ;;  %s1211_s17 = smov 0  }
   0x7 LB: > { %s813_s18 = sadd.s32 4294967295, %s1171_s17   ;;  %s814_s19 = sadd.s32 4294967294, %s1171_s17   ;;  %s1171_s17 = sphi %s1211_s17, %s20_s17   ;;  %s1167_s16 = sphi %s1209_s16, %s1657_s16   ;;  %s1163_s15 = sphi %s1207_s15, %s1656_s15   ;;  %s1159_s14 = sphi %s1205_s14, %s1655_s14   ;;  %s1155_s13 = sphi %s1203_s13, %s1654_s13   ;;  %s1151_s12 = sphi %s1201_s12, %s1653_s12  }
   0x8   : > { %p54_p0 = scmp.ne.s32.totalorder %s1155_s13, %s1151_s12  ;;  %p1235_p1 = scmp.eq.s32.totalorder %s813_s18, 0 }
   0x9   : > { %p1239_p2 = scmp.eq.s32.totalorder %s813_s18, 1  ;;  %p128_p3 = scmp.eq.s32.totalorder %s814_s19, 1 }
   0xa   : > { %p1245_p4 = por %p1235_p1, %p54_p0  ;;  %p815_p5 = scmp.ge.s32.totalorder %s1171_s17, 1 }
   0xb   : > { %p1250_p6 = por %p128_p3, %p54_p0  ;;  %p135_p7 = scmp.lt.s32.totalorder %s1171_s17, 3 }
   0xc   : > { %s1173_s25 = smov [#allocation5]   ;;  %s1174_s28 = smov [#allocation7]  }
   0xd   : > { %s1645_s23 = scalar_select %p1250_p6, 1, 0 }
   0xe   : > { %p1255_p8 = pnand %p815_p5, %p135_p7  ;;  %s147_s26 = sshll.u32 %s1173_s25, 4  ;;  %s148_s26 = int_to_ptr.vmem [resolvable:$true] %s147_s26 }
   0xf   : > { %s161_s29 = sshll.u32 %s1174_s28, 4  ;;  %s1018_s30 = scalar_lea.vmem %s148_s26, 256  ;;  %s162_s29 = int_to_ptr.vmem [resolvable:$true] %s161_s29 }
  0x10   : > { %p895_p9 = pneg %p1255_p8  ;;  %p1019_p13 = scmp.ne.s32.totalorder %s148_s26, %s1018_s30 }
  0x11   : > { %p1026_p5 = scmp.lt.s32.totalorder %s148_s26, %s148_s26  ;;  %p1027_p7 = scmp.lt.s32.totalorder %s1018_s30, %s1018_s30 }
  0x12   : > { %p1264_p11 = pnand %p895_p9, %p1235_p1 }
  0x13   : > { %p1028_p10 = por %p1027_p7, %p1026_p5 }
  0x14   : > { %p1009_p12 = pneg %p1264_p11 }
  0x16   : > { %p1021_p0 = pnand %p1019_p13, %p1009_p12 }
  0x18   : > { %p1022_p3 = pneg %p1021_p0 }
  0x1a   : > { %p1029_p9 = pnand %p1028_p10, %p1022_p3 }
  0x1c   : > { %1032 = shalt.err (!%p1029_p9)
}
  0x1d   : > { %s1641_s4 = smov 64   ;;  %s1176_s5 = smov 4  }
  0x1e   : > { %898 = dma.hbm_to_vmem [thread:$0]  (!%p1264_p11), %s1638_s1, 256, %s148_s26, [#allocation6], %s1641_s4, %s1641_s4, %s1176_s5  }
  0x1f   : > { %s1044_s8 = scalar_lea.vmem %s162_s29, 64  ;;  %p1052_p10 = scmp.lt.s32.totalorder %s162_s29, %s162_s29 }
  0x20   : > { %p1045_p13 = scmp.ne.s32.totalorder %s162_s29, %s1044_s8  ;;  %p1053_p3 = scmp.lt.s32.totalorder %s1044_s8, %s1044_s8 }
  0x22   : > { %p1047_p0 = pnand %p1045_p13, %p1009_p12  ;;  %p1054_p7 = por %p1053_p3, %p1052_p10 }
  0x24   : > { %p1048_p5 = pneg %p1047_p0 }
  0x26   : > { %p1055_p9 = pnand %p1054_p7, %p1048_p5 }
  0x28   : > { %1058 = shalt.err (!%p1055_p9)
}
  0x29   : > { %901 = dma.hbm_to_vmem [thread:$0]  (!%p1264_p11), %s1639_s2, 64, %s162_s29, [#allocation6]  }
  0x2a   : > { %s32_s11 = sadd.s32 1, %s1167_s16  ;;  %s41_s18 = sadd.s32 1, %s1159_s14 }
  0x2b   : > { %p34_p12 = scmp.ge.s32.totalorder %s32_s11, 2  ;;  %p48_p13 = scmp.ne.s32.totalorder %s1159_s14, %s1155_s13 }
  0x2c   : > { %p49_p0 = scmp.eq.s32.totalorder %s1171_s17, 0  ;;  %p912_p5 = scmp.lt.s32.totalorder %s1171_s17, 2 }
  0x2d   : > { %s1659_s11 = smov (%p34_p12, %s32_s11), 0  ;;  %p1299_p3 = por %p1239_p2, %p48_p13 }
  0x2e   : > { %p50_p10 = por %p49_p0, %p48_p13  ;;  %s36_s25 = ssub.s32 %s1167_s16, %s1659_s11 }
  0x2f   : > { %s172_s26 = sand.u32 1, %s1159_s14   ;;  %p39_p7 = scmp.eq.s32.totalorder %s36_s25, 0 }
  0x30   : > { %s819_s27 = sshll.u32 %s172_s26, 4  ;;  %s847_s28 = sshll.u32 %s1167_s16, 8 }
  0x31   : > { %s1308_s29 = scalar_select %p39_p7, %s1159_s14, %s41_s18  }
  0x32   : > { %s183_s7 = scalar_lea.hbm %s1637_s0, %s847_s28  ;;  %s176_s8 = scalar_lea.vmem [#allocation2], %s819_s27 }
  0x33   : > { %s184_s9 = sshll.u32 %s176_s8, 4  ;;  %p1315_p11 = pnand %p912_p5, %p50_p10  ;;  %s185_s9 = int_to_ptr.vmem [resolvable:$true] %s184_s9 }
  0x34   : > { %s173_s10 = scalar_lea.sflag [#allocation3], %s172_s26  ;;  %s1072_s25 = scalar_lea.vmem %s185_s9, 256 }
  0x35   : > { %p1061_p2 = pneg %p1315_p11  ;;  %p1073_p9 = scmp.ne.s32.totalorder %s185_s9, %s1072_s25 }
  0x36   : > { %s1177_s18 = smov [#allocation2]  }
  0x37   : > { %p1075_p12 = pnand %p1073_p9, %p1061_p2  ;;  %s1077_s4 = sshll.u32 %s1177_s18, 4  ;;  %s1078_s4 = int_to_ptr.vmem [resolvable:$false] %s1077_s4 }
  0x38   : > { %s1079_s28 = scalar_lea.vmem %s1078_s4, 512  ;;  %p1080_p0 = scmp.lt.s32.totalorder %s185_s9, %s1078_s4 }
  0x39   : > { %p1076_p13 = pneg %p1075_p12  ;;  %p1081_p7 = scmp.lt.s32.totalorder %s1079_s28, %s1072_s25 }
  0x3b   : > { %p1082_p6 = por %p1081_p7, %p1080_p0 }
  0x3d   : > { %p1083_p5 = pnand %p1082_p6, %p1076_p13 }
  0x3f   : > { %1086 = shalt.err (!%p1083_p5)
}
  0x40   : > { %s1650_s27 = smov 64   ;;  %196 = sbr.rel (%p1255_p8) target bundleno = 633 (0x279), region = 32 }
  0x41   : > { %905 = dma.hbm_to_vmem [thread:$0]  (!%p1315_p11), %s183_s7, 256, %s185_s9, %s173_s10, %s1650_s27, %s1650_s27, %s1176_s5  }
  0x42   : > { %s1329_s26 = sand.u32 (!%p1255_p8), 1, %s1155_s13  }
  0x43   : > { %s823_s4 = sshll.u32 (!%p1255_p8), %s1329_s26, 4  ;;  %s199_s30 = scalar_lea.sflag (!%p1255_p8), [#allocation3], %s1329_s26 }
  0x44   : > { %s202_s6 = scalar_lea.vmem (!%p1255_p8), [#allocation2], %s823_s4 }
  0x45   : > { %1138 = dma.done.wait (%p1245_p4), %s199_s30, 256  }
  0x46   : > { %1140 = vsyncadd (%p1245_p4), %s199_s30, 4294967040 }
  0x47   : > { %1142 = dma.done.wait (%p1235_p1), [#allocation6], 320  }
  0x48   : > { %1144 = vsyncadd (%p1235_p1), [#allocation6], 4294966976  ;;  %v971_v0 = vld [vmem:[%s202_s6] sm:$0xff]   ;;  %v972_v1 = vld [vmem:[%s202_s6 + $0x8] sm:$0xff]   ;;  %vm288_vm0 = vcmask 261120   ;;  %s826_s20 = sshll.u32 %s1329_s26, 7 }
  0x49   : > { %260 = vxpose.xlu0.c.b16.start [1/2] (short) %v971_v0, 128  ;;  %v973_v2 = vld [vmem:[#allocation5 + $0x8] sm:$0xff]   ;;  %v974_v3 = vld [vmem:[#allocation5] sm:$0xff]   ;;  %v1349_v12 = vld [vmem:[#allocation7] ss:$0 sm:$0xff]  ;;  %s1473_s22 = scalar_lea.vmem [#allocation8], %s826_s20  ;;  %s848_s24 = sshll.u32 %s1163_s15, 11 }
  0x4a   : > { %859 = vmatprep.subr.bf16.mxu0 %v973_v2  ;;  %879 = vmatprep.subr.bf16.mxu1 %v973_v2  ;;  %s708_s5 = sshll.u32 %s1473_s22, 4  ;;  %s1585_s9 = scalar_lea.hbm %s1640_s3, %s848_s24  ;;  %s1587_s5 = int_to_ptr.vmem [resolvable:$true] %s708_s5 }
  0x4b   : > { %860 = vmatpush3.bf16.msra.mxu0 %v973_v2  ;;  %881 = vmatpush3.bf16.msra.mxu1 %v973_v2  ;;  %s693_s21 = scalar_lea.sflag [#allocation4], %s1329_s26  ;;  %s1087_s10 = scalar_lea.vmem %s1587_s5, 2048 }
  0x4c   : > { %861 = vmatprep.subr.bf16.mxu0 %v974_v3  ;;  %880 = vmatprep.subr.bf16.mxu1 %v974_v3  ;;  %p1088_p1 = scmp.ne.s32.totalorder %s1587_s5, %s1087_s10  ;;  %s1178_s15 = smov [#allocation8]  }
  0x4d   : > { %261 = vxpose.xlu0.c.b16.end [2/2] (short) %v972_v1, 128  ;;  %s1091_s25 = sshll.u32 %s1178_s15, 4  ;;  %s1092_s25 = int_to_ptr.vmem [resolvable:$false] %s1091_s25 }
  0x4e   : > { %p1089_p4 = pnand %p1088_p1, %p1299_p3  ;;  %s1093_s18 = scalar_lea.vmem %s1092_s25, 4096 }
  0x4f   : > { %862 = vmatpush3.bf16.msra.mxu0 %v974_v3  ;;  %882 = vmatpush3.bf16.msra.mxu1 %v974_v3  ;;  %p1094_p8 = scmp.lt.s32.totalorder %s1587_s5, %s1092_s25  ;;  %p1095_p10 = scmp.lt.s32.totalorder %s1093_s18, %s1087_s10 }
  0x50   : > { %p1090_p6 = pneg %p1089_p4 }
  0x51   : > { %p1096_p11 = por %p1095_p10, %p1094_p8 }
  0x53   : > { %p1097_p2 = pnand %p1096_p11, %p1090_p6 }
  0xab   : > { %v268_v4 = vpop.trf.xlu0 }
  0xac   : > { %863 = vmatprep.mubr.msk.bf16.mxu0 %vm288_vm0, %v268_v4 }
  0xaf   : > { %v269_v5 = vpop.trf.xlu0 }
  0xb0   : > { %864 = vmatmul.mubr.msk.bf16.vlgmr.msra.gmra.mxu0 %vm288_vm0, %v269_v5 }
  0xb3   : > { %v270_v6 = vpop.trf.xlu0 }
  0xb4   : > { %867 = vmatprep.mubr.msk.bf16.mxu0 %vm288_vm0, %v270_v6 }
  0xb7   : > { %v271_v7 = vpop.trf.xlu0 }
  0xb8   : > { %868 = vmatmul.mubr.msk.bf16.gmra.mxu0 %vm288_vm0, %v271_v7 }
  0xbb   : > { %v272_v8 = vpop.trf.xlu0 }
  0xbc   : > { %871 = vmatprep.mubr.msk.bf16.mxu1 %vm288_vm0, %v272_v8 }
  0xbf   : > { %v273_v9 = vpop.trf.xlu0 }
  0xc0   : > { %872 = vmatmul.mubr.msk.bf16.vlgmr.msra.gmra.mxu1 %vm288_vm0, %v273_v9 }
  0xc3   : > { %v274_v10 = vpop.trf.xlu0 }
  0xc4   : > { %875 = vmatprep.mubr.msk.bf16.mxu1 %vm288_vm0, %v274_v10 }
  0xc7   : > { %v275_v11 = vpop.trf.xlu0 }
  0xc8   : > { %876 = vmatmul.mubr.msk.bf16.gmra.mxu1 %vm288_vm0, %v275_v11 }
 0x170   : > { %v865_v13 = vpop.f32.mrf.mxu0 }
 0x171   : > { %v1352_v14 = vadd.f32 %v865_v13, %v1349_v12 }
 0x172   : > { %v347_v15 = vpop.f32.mrf.mxu0 }
 0x173   : > { %v1355_v16 = vadd.f32 %v1349_v12, %v347_v15  ;;  %414 = vadd.xlane.f32.xlu0 %v1352_v14  ;;  %v460_v22 = vmul.f32 %v1352_v14, %v1352_v14 }
 0x174   : > { %v866_v17 = vpop.f32.mrf.mxu0 }
 0x175   : > { %v1359_v18 = vadd.f32 %v866_v17, %v1349_v12  ;;  %410 = vadd.xlane.f32.xlu1 %v1355_v16  ;;  %v458_v30 = vmul.f32 %v1355_v16, %v1355_v16 }
 0x176   : > { %v350_v19 = vpop.f32.mrf.mxu0 }
 0x177   : > { %v1363_v20 = vadd.f32 %v1349_v12, %v350_v19  ;;  %v461_v21 = vmul.f32 %v1359_v18, %v1359_v18 }
 0x178   : > { %v869_v23 = vpop.f32.mrf.mxu0 }
 0x179   : > { %480 = vadd.xlane.f32.xlu0 %v461_v21  ;;  %478 = vadd.xlane.f32.xlu1 %v460_v22  ;;  %v459_v25 = vmul.f32 %v1363_v20, %v1363_v20  ;;  %v1385_v36 = vadd.f32 %v869_v23, %v1349_v12 }
 0x17a   : > { %v363_v24 = vpop.f32.mrf.mxu0 }
 0x17b   : > { %v1400_v44 = vadd.f32 %v1349_v12, %v363_v24  ;;  %v464_v48 = vmul.f32 %v1385_v36, %v1385_v36 }
 0x17c   : > { %v870_v26 = vpop.f32.mrf.mxu0 }
 0x17d   : > { %v1372_v27 = vadd.f32 %v870_v26, %v1349_v12  ;;  %476 = vadd.xlane.f32.xlu0 %v459_v25  ;;  %416 = vadd.xlane.f32.xlu1 %v1359_v18  ;;  %v462_v51 = vmul.f32 %v1400_v44, %v1400_v44 }
 0x17e   : > { %v366_v28 = vpop.f32.mrf.mxu0 }
 0x17f   : > { %v1376_v29 = vadd.f32 %v1349_v12, %v366_v28  ;;  %v465_v31 = vmul.f32 %v1372_v27, %v1372_v27 }
 0x180   : > { %v873_v32 = vpop.f32.mrf.mxu1 }
 0x181   : > { %474 = vadd.xlane.f32.xlu1 %v458_v30  ;;  %488 = vadd.xlane.f32.xlu0 %v465_v31  ;;  %v463_v33 = vmul.f32 %v1376_v29, %v1376_v29  ;;  %v1421_v53 = vadd.f32 %v873_v32, %v1349_v12 }
 0x182   : > { %v379_v34 = vpop.f32.mrf.mxu1 }
 0x183   : > { %v1426_v54 = vadd.f32 %v1349_v12, %v379_v34  ;;  %v468_v55 = vmul.f32 %v1421_v53, %v1421_v53 }
 0x184   : > { %v874_v35 = vpop.f32.mrf.mxu1 }
 0x185   : > { %v1388_v37 = vadd.f32 %v874_v35, %v1349_v12  ;;  %412 = vadd.xlane.f32.xlu1 %v1363_v20  ;;  %484 = vadd.xlane.f32.xlu0 %v463_v33  ;;  %v466_v56 = vmul.f32 %v1426_v54, %v1426_v54 }
 0x186   : > { %v382_v38 = vpop.f32.mrf.mxu1 }
 0x187   : > { %v1392_v39 = vadd.f32 %v1349_v12, %v382_v38  ;;  %v469_v40 = vmul.f32 %v1388_v37, %v1388_v37 }
 0x188   : > { %v877_v41 = vpop.f32.mrf.mxu1 }
 0x189   : > { %422 = vadd.xlane.f32.xlu1 %v1385_v36  ;;  %496 = vadd.xlane.f32.xlu0 %v469_v40  ;;  %v467_v42 = vmul.f32 %v1392_v39, %v1392_v39  ;;  %v1436_v57 = vadd.f32 %v877_v41, %v1349_v12  ;;  %v1459_v41 = vld [vmem:[#allocation7 + $0x1] ss:$0 sm:$0xff] }
 0x18a   : > { %v395_v43 = vpop.f32.mrf.mxu1 }
 0x18b   : > { %v1440_v58 = vadd.f32 %v1349_v12, %v395_v43  ;;  %v472_v60 = vmul.f32 %v1436_v57, %v1436_v57 }
 0x18c   : > { %v878_v45 = vpop.f32.mrf.mxu1 }
 0x18d   : > { %418 = vadd.xlane.f32.xlu1 %v1400_v44  ;;  %492 = vadd.xlane.f32.xlu0 %v467_v42  ;;  %v1404_v46 = vadd.f32 %v878_v45, %v1349_v12  ;;  %v470_v59 = vmul.f32 %v1440_v58, %v1440_v58 }
 0x18e   : > { %v398_v47 = vpop.f32.mrf.mxu1 }
 0x18f   : > { %v1410_v49 = vadd.f32 %v1349_v12, %v398_v47  ;;  %v473_v52 = vmul.f32 %v1404_v46, %v1404_v46 }
 0x191   : > { %486 = vadd.xlane.f32.xlu1 %v464_v48  ;;  %440 = vadd.xlane.f32.xlu0 %v1404_v46  ;;  %v471_v50 = vmul.f32 %v1410_v49, %v1410_v49 }
 0x195   : > { %424 = vadd.xlane.f32.xlu1 %v1372_v27  ;;  %436 = vadd.xlane.f32.xlu0 %v1410_v49 }
 0x199   : > { %482 = vadd.xlane.f32.xlu1 %v462_v51  ;;  %500 = vadd.xlane.f32.xlu0 %v471_v50 }
 0x19d   : > { %420 = vadd.xlane.f32.xlu1 %v1376_v29  ;;  %504 = vadd.xlane.f32.xlu0 %v473_v52  ;;  %v1468_v52 = vld [vmem:[#allocation7 + $0x2] ss:$0 sm:$0xff] }
 0x1a1   : > { %430 = vadd.xlane.f32.xlu1 %v1421_v53 }
 0x1a5   : > { %426 = vadd.xlane.f32.xlu1 %v1426_v54 }
 0x1a9   : > { %494 = vadd.xlane.f32.xlu1 %v468_v55 }
 0x1ad   : > { %432 = vadd.xlane.f32.xlu1 %v1388_v37 }
 0x1b1   : > { %490 = vadd.xlane.f32.xlu1 %v466_v56 }
 0x1b5   : > { %428 = vadd.xlane.f32.xlu1 %v1392_v39 }
 0x1b9   : > { %438 = vadd.xlane.f32.xlu1 %v1436_v57 }
 0x1bd   : > { %434 = vadd.xlane.f32.xlu1 %v1440_v58 }
 0x1c1   : > { %498 = vadd.xlane.f32.xlu1 %v470_v59 }
 0x1c5   : > { %502 = vadd.xlane.f32.xlu1 %v472_v60 }
 0x1fc   : > { %v415_v61 = vpop.xlane.xlu0 %414 }
 0x1fd   : > { %v444_v63 = vmul.f32 0.0078125, %v415_v61 }
 0x1fe   : > { %v411_v62 = vpop.xlane.xlu1 %410 }
 0x1ff   : > { %v524_v2 = vmul.f32 %v444_v63, %v444_v63  ;;  %v1447_v7 = vmul.f32 0.0078125, %v411_v62  ;;  %v625_v50 = vsub.f32 %v1352_v14, %v444_v63 }
 0x201   : > { %v522_v17 = vmul.f32 %v1447_v7, %v1447_v7 }
 0x202   : > { %v479_v0 = vpop.xlane.xlu1 %478  ;;  %v481_v1 = vpop.xlane.xlu0 %480 }
 0x203   : > { %v508_v3 = vmul.f32 0.0078125, %v479_v0  ;;  %v509_v11 = vmul.f32 0.0078125, %v481_v1 }
 0x205   : > { %v540_v4 = vsub.f32 %v508_v3, %v524_v2 }
 0x206   : > { %v417_v5 = vpop.xlane.xlu1 %416  ;;  %v477_v6 = vpop.xlane.xlu0 %476 }
 0x207   : > { %v556_v8 = vmax.f32 %v540_v4, 0.0  ;;  %v445_v9 = vmul.f32 0.0078125, %v417_v5  ;;  %v507_v31 = vmul.f32 0.0078125, %v477_v6 }
 0x209   : > { %v572_v10 = vadd.f32 1e-05, %v556_v8  ;;  %v525_v12 = vmul.f32 %v445_v9, %v445_v9  ;;  %v626_v63 = vsub.f32 %v1359_v18, %v445_v9  ;;  %v623_v8 = vsub.f32 %v1355_v16, %v1447_v7 }
 0x20a   : > { %v475_v13 = vpop.xlane.xlu1 %474  ;;  %v489_v15 = vpop.xlane.xlu0 %488 }
 0x20b   : > { %975 = vrsqrt.f32 %v572_v10  ;;  %v541_v19 = vsub.f32 %v509_v11, %v525_v12  ;;  %v506_v21 = vmul.f32 0.0078125, %v475_v13  ;;  %v513_v10 = vmul.f32 0.0078125, %v489_v15 }
 0x20d   : > { %v557_v22 = vmax.f32 %v541_v19, 0.0  ;;  %v538_v23 = vsub.f32 %v506_v21, %v522_v17 }
 0x20e   : > { %v413_v24 = vpop.xlane.xlu1 %412  ;;  %v1451_v25 = vpop.xlane.xlu0 %484 }
 0x20f   : > { %v573_v26 = vadd.f32 1e-05, %v557_v22  ;;  %v554_v28 = vmax.f32 %v538_v23, 0.0  ;;  %v1453_v30 = vmul.f32 0.0078125, %v413_v24 }
 0x211   : > { %977 = vrsqrt.f32 %v573_v26  ;;  %v570_v32 = vadd.f32 1e-05, %v554_v28  ;;  %v523_v33 = vmul.f32 %v1453_v30, %v1453_v30 }
 0x212   : > { %v423_v34 = vpop.xlane.xlu1 %422  ;;  %v1457_v35 = vpop.xlane.xlu0 %496 }
 0x213   : > { %979 = vrsqrt.f32 %v570_v32  ;;  %v539_v38 = vsub.f32 %v507_v31, %v523_v33  ;;  %v1463_v47 = vmul.f32 0.0078125, %v423_v34  ;;  %v624_v34 = vsub.f32 %v1363_v20, %v1453_v30 }
 0x214   : > { %v511_v20 = vmul.f32 0.0078125, %v1451_v25 }
 0x215   : > { %v555_v40 = vmax.f32 %v539_v38, 0.0  ;;  %v528_v60 = vmul.f32 %v1463_v47, %v1463_v47 }
 0x216   : > { %v419_v42 = vpop.xlane.xlu1 %418  ;;  %v1461_v43 = vpop.xlane.xlu0 %492 }
 0x217   : > { %v571_v45 = vadd.f32 1e-05, %v555_v40  ;;  %v1482_v11 = vmul.f32 0.0078125, %v419_v42 }
 0x218   : > { %v976_v48 = vpop.eup %975 }
 0x219   : > { %v609_v51 = vmul.f32 %v976_v48, %v1459_v41  ;;  %981 = vrsqrt.f32 %v571_v45  ;;  %v526_v23 = vmul.f32 %v1482_v11, %v1482_v11 }
 0x21a   : > { %v487_v55 = vpop.xlane.xlu1 %486  ;;  %v441_v56 = vpop.xlane.xlu0 %440 }
 0x21b   : > { %v641_v59 = vmul.f32 %v625_v50, %v609_v51  ;;  %v512_v61 = vmul.f32 0.0078125, %v487_v55  ;;  %v1494_v24 = vmul.f32 0.0078125, %v441_v56 }
 0x21d   : > { %v662_v62 = vadd.f32 %v1468_v52, %v641_v59  ;;  %v544_v0 = vsub.f32 %v512_v61, %v528_v60  ;;  %v537_v38 = vmul.f32 %v1494_v24, %v1494_v24 }
 0x21e   : > { %v978_v1 = vpop.eup %977  ;;  %v425_v2 = vpop.xlane.xlu1 %424 }
 0x21f   : > { %v437_v3 = vpop.xlane.xlu0 %436  ;;  %678 = vst [vmem:[%s1473_s22 + $0x10] sm:$0xff] %v662_v62  ;;  %v610_v14 = vmul.f32 %v978_v1, %v1459_v41  ;;  %v560_v4 = vmax.f32 %v544_v0, 0.0  ;;  %v1478_v5 = vmul.f32 0.0078125, %v425_v2 }
 0x220   : > { %v980_v6 = vpop.eup %979  ;;  %v1484_v12 = vmul.f32 0.0078125, %v437_v3 }
 0x221   : > { %v642_v13 = vmul.f32 %v626_v63, %v610_v14  ;;  %v607_v17 = vmul.f32 %v980_v6, %v1459_v41  ;;  %v576_v19 = vadd.f32 1e-05, %v560_v4  ;;  %v529_v18 = vmul.f32 %v1478_v5, %v1478_v5 }
 0x222   : > { %v535_v9 = vmul.f32 %v1484_v12, %v1484_v12  ;;  %v483_v21 = vpop.xlane.xlu1 %482 }
 0x223   : > { %v501_v22 = vpop.xlane.xlu0 %500  ;;  %v663_v16 = vadd.f32 %v1468_v52, %v642_v13  ;;  %v639_v7 = vmul.f32 %v623_v8, %v607_v17  ;;  %983 = vrsqrt.f32 %v576_v19  ;;  %v545_v15 = vsub.f32 %v513_v10, %v529_v18 }
 0x224   : > { %v510_v26 = vmul.f32 0.0078125, %v483_v21  ;;  %v519_v28 = vmul.f32 0.0078125, %v501_v22  ;;  %v629_v17 = vsub.f32 %v1385_v36, %v1463_v47  ;;  %v630_v36 = vsub.f32 %v1372_v27, %v1478_v5 }
 0x225   : > { %679 = vst [vmem:[%s1473_s22 + $0x18] sm:$0xff] %v663_v16  ;;  %v660_v31 = vadd.f32 %v1468_v52, %v639_v7  ;;  %v561_v32 = vmax.f32 %v545_v15, 0.0  ;;  %v636_v27 = vsub.f32 %v1410_v49, %v1484_v12 }
 0x226   : > { %v982_v33 = vpop.eup %981  ;;  %v542_v40 = vsub.f32 %v510_v26, %v526_v23  ;;  %v551_v42 = vsub.f32 %v519_v28, %v535_v9  ;;  %v421_v45 = vpop.xlane.xlu1 %420 }
 0x227   : > { %v505_v48 = vpop.xlane.xlu0 %504  ;;  %676 = vst [vmem:[%s1473_s22] sm:$0xff] %v660_v31  ;;  %v608_v50 = vmul.f32 %v982_v33, %v1459_v41  ;;  %v577_v51 = vadd.f32 1e-05, %v561_v32  ;;  %v1504_v55 = vmul.f32 0.0078125, %v421_v45  ;;  %v517_v33 = vmul.f32 0.0078125, %v1457_v35 }
 0x228   : > { %v521_v56 = vmul.f32 0.0078125, %v505_v48  ;;  %v558_v59 = vmax.f32 %v542_v40, 0.0  ;;  %v567_v60 = vmax.f32 %v551_v42, 0.0  ;;  %v627_v45 = vsub.f32 %v1400_v44, %v1482_v11 }
 0x229   : > { %v640_v61 = vmul.f32 %v624_v34, %v608_v50  ;;  %985 = vrsqrt.f32 %v577_v51  ;;  %v527_v30 = vmul.f32 %v1504_v55, %v1504_v55  ;;  %v638_v44 = vsub.f32 %v1404_v46, %v1494_v24 }
 0x22a   : > { %v574_v62 = vadd.f32 1e-05, %v558_v59  ;;  %v583_v0 = vadd.f32 1e-05, %v567_v60  ;;  %v553_v1 = vsub.f32 %v521_v56, %v537_v38  ;;  %v431_v2 = vpop.xlane.xlu1 %430 }
 0x22b   : > { %v661_v3 = vadd.f32 %v1468_v52, %v640_v61  ;;  %v543_v14 = vsub.f32 %v511_v20, %v527_v30  ;;  %v1511_v10 = vmul.f32 0.0078125, %v431_v2  ;;  %v628_v30 = vsub.f32 %v1376_v29, %v1504_v55 }
 0x22c   : > { %987 = vrsqrt.f32 %v574_v62  ;;  %v569_v63 = vmax.f32 %v553_v1, 0.0 }
 0x22d   : > { %677 = vst [vmem:[%s1473_s22 + $0x8] sm:$0xff] %v661_v3  ;;  %989 = vrsqrt.f32 %v583_v0  ;;  %v559_v4 = vmax.f32 %v543_v14, 0.0  ;;  %v532_v21 = vmul.f32 %v1511_v10, %v1511_v10 }
 0x22e   : > { %v585_v6 = vadd.f32 1e-05, %v569_v63  ;;  %v427_v8 = vpop.xlane.xlu1 %426 }
 0x22f   : > { %v575_v25 = vadd.f32 1e-05, %v559_v4  ;;  %v1525_v31 = vmul.f32 0.0078125, %v427_v8  ;;  %v515_v4 = vmul.f32 0.0078125, %v1461_v43 }
 0x230   : > { %v984_v13 = vpop.eup %983  ;;  %991 = vrsqrt.f32 %v585_v6 }
 0x231   : > { %v613_v19 = vmul.f32 %v984_v13, %v1459_v41  ;;  %993 = vrsqrt.f32 %v575_v25  ;;  %v530_v59 = vmul.f32 %v1525_v31, %v1525_v31 }
 0x232   : > { %v495_v18 = vpop.xlane.xlu1 %494 }
 0x233   : > { %v645_v9 = vmul.f32 %v629_v17, %v613_v19  ;;  %v516_v22 = vmul.f32 0.0078125, %v495_v18 }
 0x235   : > { %v666_v16 = vadd.f32 %v1468_v52, %v645_v9  ;;  %v548_v7 = vsub.f32 %v516_v22, %v532_v21  ;;  %v633_v22 = vsub.f32 %v1421_v53, %v1511_v10 }
 0x236   : > { %v986_v15 = vpop.eup %985  ;;  %v433_v23 = vpop.xlane.xlu1 %432 }
 0x237   : > { %682 = vst [vmem:[%s1473_s22 + $0x30] sm:$0xff] %v666_v16  ;;  %v614_v26 = vmul.f32 %v986_v15, %v1459_v41  ;;  %v564_v47 = vmax.f32 %v548_v7, 0.0  ;;  %v1523_v28 = vmul.f32 0.0078125, %v433_v23 }
 0x239   : > { %v988_v32 = vpop.eup %987  ;;  %v646_v34 = vmul.f32 %v630_v36, %v614_v26  ;;  %v580_v38 = vadd.f32 1e-05, %v564_v47  ;;  %v533_v40 = vmul.f32 %v1523_v28, %v1523_v28 }
 0x23a   : > { %v990_v42 = vpop.eup %989  ;;  %v611_v5 = vmul.f32 %v988_v32, %v1459_v41  ;;  %v491_v48 = vpop.xlane.xlu1 %490 }
 0x23b   : > { %v667_v50 = vadd.f32 %v1468_v52, %v646_v34  ;;  %v620_v35 = vmul.f32 %v990_v42, %v1459_v41  ;;  %995 = vrsqrt.f32 %v580_v38  ;;  %v549_v51 = vsub.f32 %v517_v33, %v533_v40 }
 0x23c   : > { %v643_v56 = vmul.f32 %v627_v45, %v611_v5  ;;  %v514_v60 = vmul.f32 0.0078125, %v491_v48  ;;  %v634_v34 = vsub.f32 %v1388_v37, %v1523_v28 }
 0x23d   : > { %v992_v61 = vpop.eup %991  ;;  %683 = vst [vmem:[%s1473_s22 + $0x38] sm:$0xff] %v667_v50  ;;  %v652_v49 = vmul.f32 %v636_v27, %v620_v35  ;;  %v565_v11 = vmax.f32 %v549_v51, 0.0  ;;  %v631_v50 = vsub.f32 %v1426_v54, %v1525_v31 }
 0x23e   : > { %v994_v12 = vpop.eup %993  ;;  %v664_v20 = vadd.f32 %v1468_v52, %v643_v56  ;;  %v622_v62 = vmul.f32 %v992_v61, %v1459_v41  ;;  %v546_v0 = vsub.f32 %v514_v60, %v530_v59  ;;  %v429_v1 = vpop.xlane.xlu1 %428 }
 0x23f   : > { %v673_v2 = vadd.f32 %v1468_v52, %v652_v49  ;;  %v612_v3 = vmul.f32 %v994_v12, %v1459_v41  ;;  %v581_v46 = vadd.f32 1e-05, %v565_v11  ;;  %v451_v24 = vmul.f32 0.0078125, %v429_v1 }
 0x240   : > { %680 = vst [vmem:[%s1473_s22 + $0x20] sm:$0xff] %v664_v20  ;;  %v654_v14 = vmul.f32 %v638_v44, %v622_v62  ;;  %v562_v63 = vmax.f32 %v546_v0, 0.0 }
 0x241   : > { %689 = vst [vmem:[%s1473_s22 + $0x68] sm:$0xff] %v673_v2  ;;  %v644_v6 = vmul.f32 %v628_v30, %v612_v3  ;;  %997 = vrsqrt.f32 %v581_v46  ;;  %v531_v29 = vmul.f32 %v451_v24, %v451_v24  ;;  %v632_v44 = vsub.f32 %v1392_v39, %v451_v24 }
 0x242   : > { %v675_v55 = vadd.f32 %v1468_v52, %v654_v14  ;;  %v578_v8 = vadd.f32 1e-05, %v562_v63  ;;  %v439_v25 = vpop.xlane.xlu1 %438 }
 0x243   : > { %v665_v13 = vadd.f32 %v1468_v52, %v644_v6  ;;  %v547_v17 = vsub.f32 %v515_v4, %v531_v29  ;;  %v456_v23 = vmul.f32 0.0078125, %v439_v25 }
 0x244   : > { %691 = vst [vmem:[%s1473_s22 + $0x78] sm:$0xff] %v675_v55  ;;  %999 = vrsqrt.f32 %v578_v8 }
 0x245   : > { %681 = vst [vmem:[%s1473_s22 + $0x28] sm:$0xff] %v665_v13  ;;  %v563_v19 = vmax.f32 %v547_v17, 0.0  ;;  %v536_v10 = vmul.f32 %v456_v23, %v456_v23  ;;  %v637_v62 = vsub.f32 %v1436_v57, %v456_v23 }
 0x246   : > { %v435_v18 = vpop.xlane.xlu1 %434 }
 0x247   : > { %v579_v9 = vadd.f32 1e-05, %v563_v19  ;;  %v454_v21 = vmul.f32 0.0078125, %v435_v18 }
 0x248   : > { %v996_v43 = vpop.eup %995 }
 0x249   : > { %v617_v16 = vmul.f32 %v996_v43, %v1459_v41  ;;  %1001 = vrsqrt.f32 %v579_v9  ;;  %v534_v26 = vmul.f32 %v454_v21, %v454_v21  ;;  %v635_v11 = vsub.f32 %v1440_v58, %v454_v21 }
 0x24a   : > { %v499_v7 = vpop.xlane.xlu1 %498 }
 0x24b   : > { %v649_v15 = vmul.f32 %v633_v22, %v617_v16  ;;  %v518_v36 = vmul.f32 0.0078125, %v499_v7 }
 0x24d   : > { %v670_v47 = vadd.f32 %v1468_v52, %v649_v15  ;;  %v550_v32 = vsub.f32 %v518_v36, %v534_v26 }
 0x24e   : > { %v998_v33 = vpop.eup %997  ;;  %v503_v38 = vpop.xlane.xlu1 %502 }
 0x24f   : > { %686 = vst [vmem:[%s1473_s22 + $0x50] sm:$0xff] %v670_v47  ;;  %v618_v53 = vmul.f32 %v998_v33, %v1459_v41  ;;  %v566_v40 = vmax.f32 %v550_v32, 0.0  ;;  %v520_v42 = vmul.f32 0.0078125, %v503_v38 }
 0x251   : > { %v1000_v45 = vpop.eup %999  ;;  %v650_v27 = vmul.f32 %v634_v34, %v618_v53  ;;  %v582_v5 = vadd.f32 1e-05, %v566_v40  ;;  %v552_v48 = vsub.f32 %v520_v42, %v536_v10 }
 0x252   : > { %v615_v35 = vmul.f32 %v1000_v45, %v1459_v41 }
 0x253   : > { %v671_v37 = vadd.f32 %v1468_v52, %v650_v27  ;;  %1003 = vrsqrt.f32 %v582_v5  ;;  %v568_v28 = vmax.f32 %v552_v48, 0.0 }
 0x254   : > { %v647_v51 = vmul.f32 %v631_v50, %v615_v35 }
 0x255   : > { %687 = vst [vmem:[%s1473_s22 + $0x58] sm:$0xff] %v671_v37  ;;  %v584_v56 = vadd.f32 1e-05, %v568_v28 }
 0x256   : > { %v1002_v59 = vpop.eup %1001  ;;  %v668_v60 = vadd.f32 %v1468_v52, %v647_v51 }
 0x257   : > { %v616_v61 = vmul.f32 %v1002_v59, %v1459_v41  ;;  %1005 = vrsqrt.f32 %v584_v56 }
 0x258   : > { %684 = vst [vmem:[%s1473_s22 + $0x40] sm:$0xff] %v668_v60 }
 0x259   : > { %v648_v54 = vmul.f32 %v632_v44, %v616_v61 }
 0x25b   : > { %v669_v31 = vadd.f32 %v1468_v52, %v648_v54 }
 0x25d   : > { %685 = vst [vmem:[%s1473_s22 + $0x48] sm:$0xff] %v669_v31 }
 0x260   : > { %v1004_v49 = vpop.eup %1003 }
 0x261   : > { %v619_v12 = vmul.f32 %v1004_v49, %v1459_v41 }
 0x263   : > { %v651_v20 = vmul.f32 %v635_v11, %v619_v12 }
 0x264   : > { %v1006_v30 = vpop.eup %1005 }
 0x265   : > { %v672_v39 = vadd.f32 %v1468_v52, %v651_v20  ;;  %v621_v0 = vmul.f32 %v1006_v30, %v1459_v41 }
 0x267   : > { %688 = vst [vmem:[%s1473_s22 + $0x60] sm:$0xff] %v672_v39  ;;  %v653_v1 = vmul.f32 %v637_v62, %v621_v0 }
 0x269   : > { %v674_v57 = vadd.f32 %v1468_v52, %v653_v1 }
 0x26b   : > { %690 = vst [vmem:[%s1473_s22 + $0x70] sm:$0xff] %v674_v57 }
 0x26c   : > { %1100 = shalt.err (!%p1097_p2)
}
 0x26d   : > { %s1101_s28 = scalar_lea.hbm %s1585_s9, 2048  ;;  %s1105_s30 = scalar_lea.hbm %s1640_s3, 4096 }
 0x26e   : > { %p1102_p9 = scmp.ne.s32.totalorder %s1585_s9, %s1101_s28  ;;  %p1106_p0 = scmp.lt.s32.totalorder %s1585_s9, %s1640_s3 }
 0x26f   : > { %p1107_p7 = scmp.lt.s32.totalorder %s1105_s30, %s1101_s28 }
 0x270   : > { %p1103_p12 = pnand %p1102_p9, %p1299_p3 }
 0x271   : > { %p1108_p5 = por %p1107_p7, %p1106_p0 }
 0x272   : > { %p1104_p13 = pneg %p1103_p12 }
 0x274   : > { %p1109_p1 = pnand %p1108_p5, %p1104_p13 }
 0x276   : > { %1112 = shalt.err (!%p1109_p1)
}
 0x277   : > { %s1179_s22 = smov 128   ;;  %s1180_s24 = smov 8  }
 0x278   : > { %893 = dma.vmem_to_hbm [thread:$0]  (%p1299_p3), %s1587_s5, 2048, %s1585_s9, %s693_s21, %s1179_s22, %s1179_s22, %s1180_s24  }
 0x279 PF: > { %s723_s7 = sand.u32 1, %s1151_s12   ;;  %p1651_p4 = scmp.ne.s32.totalorder %s1645_s23, 0 }
 0x27a   : > { %p1652_p6 = scmp.ge.s32.totalorder %s1171_s17, 2  ;;  %s724_s8 = scalar_lea.sflag [#allocation4], %s723_s7 }
 0x27c   : > { %p907_p8 = pnand %p1652_p6, %p1651_p4 }
 0x27e   : > { %p908_p10 = pneg %p907_p8 }
 0x280   : > { %1146 = dma.done.wait (%p908_p10), %s724_s8, 2048  }
 0x281   : > { %1148 = vsyncadd (%p908_p10), %s724_s8, 4294965248  ;;  %s20_s17 = sadd.s32 1, %s1171_s17   ;;  %s1653_s12 = smov %s1155_s13 }
 0x282   : > { %p17_p11 = scmp.ge.s32.totalorder %s20_s17, 4   ;;  %s1654_s13 = smov %s1159_s14 }
 0x283   : > { %s1655_s14 = smov %s1308_s29  ;;  %s1656_s15 = smov %s1167_s16 }
 0x284   : > { %s1657_s16 = smov %s1659_s11  ;;  %19 = sbr.rel (!%p17_p11) target bundleno = 7 (0x7), region = 85 }
 0x289   :  { %729 = vsyncpa [#allocation3], 1 }
 0x28a   :  { %731 = vsyncpa [#allocation3 + $0x1], 1 }
 0x28b   :  { %732 = vsyncpa [#allocation6], 1 }
 0x28c   :  { %733 = vsyncpa [#allocation4], 1 }
 0x28d   :  { %735 = vsyncpa [#allocation4 + $0x1], 1 }

</bundles_post_ra>
